<compile_context>
chip_gen: v7x
topology: tpu7x:2x2x1
jax: 0.10.0
libtpu: 0.0.40
codegen_flags: <defaults>
</compile_context>

<pallas_src>
import functools

import jax
import jax.numpy as jnp
from jax.experimental import pallas as pl
from jax.experimental.pallas import tpu as pltpu

PAD = 128        # padded feature width (lane-dense: full 128-lane vregs)
OUT_DIM = 8      # real output width of the last Linear
N_LAYERS = 10    # 1 input layer + 8 hidden layers + 1 output layer


def mlp_kernel(x_ref, w_ref, b_ref, o_ref):
    """Full 10-layer MLP on one (BM, PAD) activation tile; params resident in VMEM."""
    h = x_ref[...]                                  # (BM, PAD) f32
    n_layers = w_ref.shape[0]
    for i in range(n_layers):                       # static unroll: 10 MXU matmuls
        w = w_ref[i]                                # (PAD, PAD) bf16 (static slice)
        b = b_ref[i]                                # (1, PAD)   f32
        h = jnp.dot(h.astype(jnp.bfloat16), w,
                    preferred_element_type=jnp.float32) + b
        if i < n_layers - 1:                        # ReLU on all but the last layer
            h = jnp.maximum(h, 0.0)
    o_ref[...] = h.astype(o_ref.dtype)              # lane-dense (BM, PAD) store


def make_params(key, latentdimensions, hidden_layer, out_dim=OUT_DIM, pad=PAD):
    """PyTorch-style uniform(-1/sqrt(fan_in), 1/sqrt(fan_in)) init, packed & padded."""
    dims = [latentdimensions] + [hidden_layer] * 9 + [out_dim]
    n_layers = len(dims) - 1
    w_stack = jnp.zeros((n_layers, pad, pad), jnp.float32)
    b_stack = jnp.zeros((n_layers, 1, pad), jnp.float32)
    for i in range(n_layers):
        fan_in, fan_out = dims[i], dims[i + 1]
        key, kw, kb = jax.random.split(key, 3)
        bound = 1.0 / (fan_in ** 0.5)
        w = jax.random.uniform(kw, (fan_in, fan_out), jnp.float32, -bound, bound)
        b = jax.random.uniform(kb, (fan_out,), jnp.float32, -bound, bound)
        w_stack = w_stack.at[i, :fan_in, :fan_out].set(w)
        b_stack = b_stack.at[i, 0, :fan_out].set(b)
    return w_stack.astype(jnp.bfloat16), b_stack     # bf16 weights, f32 biases


@functools.partial(jax.jit, static_argnames=("out_dim", "block_m"))
def neural_network_forward(x, w_stack, b_stack, out_dim=OUT_DIM, block_m=128):
    batch, latent = x.shape
    n_layers, pad, _ = w_stack.shape

    # Batch tile: up to block_m rows, multiple of 8 (sublane), batch padded to fit.
    bm = min(block_m, max(8, ((batch + 7) // 8) * 8))
    batch_p = ((batch + bm - 1) // bm) * bm
    x_p = jnp.zeros((batch_p, pad), x.dtype).at[:batch, :latent].set(x)

    grid = (batch_p // bm,)
    flops = 2 * batch_p * pad * pad * n_layers
    bytes_accessed = (x_p.size * 4 + w_stack.size * 2 + b_stack.size * 4
                      + batch_p * pad * 4)

    out_p = pl.pallas_call(
        mlp_kernel,
        out_shape=jax.ShapeDtypeStruct((batch_p, pad), x.dtype),
        grid_spec=pltpu.PrefetchScalarGridSpec(
            num_scalar_prefetch=0,
            grid=grid,
            in_specs=[
                # activations: tiled over batch, double-buffered by the pipeline
                pl.BlockSpec((bm, pad), lambda i: (i, 0)),
                # packed params: constant block index -> loaded once, stay resident
                pl.BlockSpec((n_layers, pad, pad), lambda i: (0, 0, 0)),
                pl.BlockSpec((n_layers, 1, pad), lambda i: (0, 0, 0)),
            ],
            out_specs=pl.BlockSpec((bm, pad), lambda i: (i, 0)),
        ),
        compiler_params=pltpu.CompilerParams(
            dimension_semantics=("parallel",)),
        cost_estimate=pl.CostEstimate(
            flops=flops, transcendentals=0, bytes_accessed=bytes_accessed),
    )(x_p, w_stack, b_stack)

    # Slice back to the real batch / output width outside the kernel.
    return out_p[:batch, :out_dim]


if __name__ == "__main__":
    key = jax.random.PRNGKey(0)
    k_x, k_p = jax.random.split(key)

    batch = 8
    latentdimensions = 16
    hidden_layer = 32

    x = jax.random.normal(k_x, (batch, latentdimensions), jnp.float32)
    w_stack, b_stack = make_params(k_p, latentdimensions, hidden_layer)

    out = neural_network_forward(x, w_stack, b_stack)
    out = jax.block_until_ready(out)

    # Pure-JAX reference with identical math (bf16 weights, f32 accumulation).
    h = jnp.zeros((batch, PAD), jnp.float32).at[:, :latentdimensions].set(x)
    for i in range(N_LAYERS):
        h = jnp.dot(h.astype(jnp.bfloat16), w_stack[i],
                    preferred_element_type=jnp.float32) + b_stack[i]
        if i < N_LAYERS - 1:
            h = jnp.maximum(h, 0.0)
    ref = h[:, :OUT_DIM]

    assert out.shape == (batch, OUT_DIM)
    assert jnp.allclose(out, ref, atol=1e-2, rtol=1e-2), (
        float(jnp.max(jnp.abs(out - ref))))

    print("KERNEL_OK")
</pallas_src>

<mosaic_0001>
module attributes {stable_mosaic.version = 11 : i64} {
  func.func @mlp_kernel(%arg0: i32, %arg1: memref<8x128xf32, #tpu.memory_space<vmem>>, %arg2: memref<10x128x128xbf16, #tpu.memory_space<vmem>>, %arg3: memref<10x1x128xf32, #tpu.memory_space<vmem>>, %arg4: memref<8x128xf32, #tpu.memory_space<vmem>>) attributes {dimension_semantics = [#tpu.dimension_semantics<parallel>], iteration_bounds = array<i64: 1>, scalar_prefetch = 0 : i64, scratch_operands = 0 : i64, tpu.core_type = #tpu.core_type<tc>, window_params = [{transform_indices = @transform_0, window_bounds = array<i64: 8, 128>}, {pipeline_mode = #tpu.pipeline_mode<synchronous>, transform_indices = @transform_1, window_bounds = array<i64: 10, 128, 128>}, {pipeline_mode = #tpu.pipeline_mode<synchronous>, transform_indices = @transform_2, window_bounds = array<i64: 10, 1, 128>}, {transform_indices = @transform_3, window_bounds = array<i64: 8, 128>}]} {
    %c0 = arith.constant 0 : index
    %c0_0 = arith.constant 0 : index
    %0 = vector.load %arg1[%c0, %c0_0] : memref<8x128xf32, #tpu.memory_space<vmem>>, vector<8x128xf32>
    %c0_1 = arith.constant 0 : index
    %c0_2 = arith.constant 0 : index
    %c0_3 = arith.constant 0 : index
    %1 = vector.load %arg2[%c0_1, %c0_2, %c0_3] : memref<10x128x128xbf16, #tpu.memory_space<vmem>>, vector<1x128x128xbf16>
    %2 = vector.shape_cast %1 : vector<1x128x128xbf16> to vector<128x128xbf16>
    %c0_4 = arith.constant 0 : index
    %c0_5 = arith.constant 0 : index
    %c0_6 = arith.constant 0 : index
    %3 = vector.load %arg3[%c0_4, %c0_5, %c0_6] : memref<10x1x128xf32, #tpu.memory_space<vmem>>, vector<1x1x128xf32>
    %4 = vector.shape_cast %3 : vector<1x1x128xf32> to vector<1x128xf32>
    %5 = arith.truncf %0 : vector<8x128xf32> to vector<8x128xbf16>
    %cst = arith.constant dense<0.000000e+00> : vector<8x128xf32>
    %6 = tpu.matmul %5, %2, %cst {dimension_numbers = #tpu.dot_dimension_numbers<[1], [0], [0], [1], [0, 0, 1, 1], [], []>} : vector<8x128xbf16>, vector<128x128xbf16>, vector<8x128xf32> -> vector<8x128xf32>
    %7 = vector.broadcast %4 : vector<1x128xf32> to vector<8x128xf32>
    %8 = arith.addf %6, %7 : vector<8x128xf32>
    %cst_7 = arith.constant 0.000000e+00 : f32
    %9 = vector.broadcast %cst_7 : f32 to vector<8x128xf32>
    %10 = arith.maximumf %8, %9 : vector<8x128xf32>
    %c1 = arith.constant 1 : index
    %c0_8 = arith.constant 0 : index
    %c0_9 = arith.constant 0 : index
    %11 = vector.load %arg2[%c1, %c0_8, %c0_9] : memref<10x128x128xbf16, #tpu.memory_space<vmem>>, vector<1x128x128xbf16>
    %12 = vector.shape_cast %11 : vector<1x128x128xbf16> to vector<128x128xbf16>
    %c1_10 = arith.constant 1 : index
    %c0_11 = arith.constant 0 : index
    %c0_12 = arith.constant 0 : index
    %13 = vector.load %arg3[%c1_10, %c0_11, %c0_12] : memref<10x1x128xf32, #tpu.memory_space<vmem>>, vector<1x1x128xf32>
    %14 = vector.shape_cast %13 : vector<1x1x128xf32> to vector<1x128xf32>
    %15 = arith.truncf %10 : vector<8x128xf32> to vector<8x128xbf16>
    %cst_13 = arith.constant dense<0.000000e+00> : vector<8x128xf32>
    %16 = tpu.matmul %15, %12, %cst_13 {dimension_numbers = #tpu.dot_dimension_numbers<[1], [0], [0], [1], [0, 0, 1, 1], [], []>} : vector<8x128xbf16>, vector<128x128xbf16>, vector<8x128xf32> -> vector<8x128xf32>
    %17 = vector.broadcast %14 : vector<1x128xf32> to vector<8x128xf32>
    %18 = arith.addf %16, %17 : vector<8x128xf32>
    %cst_14 = arith.constant 0.000000e+00 : f32
    %19 = vector.broadcast %cst_14 : f32 to vector<8x128xf32>
    %20 = arith.maximumf %18, %19 : vector<8x128xf32>
    %c2 = arith.constant 2 : index
    %c0_15 = arith.constant 0 : index
    %c0_16 = arith.constant 0 : index
    %21 = vector.load %arg2[%c2, %c0_15, %c0_16] : memref<10x128x128xbf16, #tpu.memory_space<vmem>>, vector<1x128x128xbf16>
    %22 = vector.shape_cast %21 : vector<1x128x128xbf16> to vector<128x128xbf16>
    %c2_17 = arith.constant 2 : index
    %c0_18 = arith.constant 0 : index
    %c0_19 = arith.constant 0 : index
    %23 = vector.load %arg3[%c2_17, %c0_18, %c0_19] : memref<10x1x128xf32, #tpu.memory_space<vmem>>, vector<1x1x128xf32>
    %24 = vector.shape_cast %23 : vector<1x1x128xf32> to vector<1x128xf32>
    %25 = arith.truncf %20 : vector<8x128xf32> to vector<8x128xbf16>
    %cst_20 = arith.constant dense<0.000000e+00> : vector<8x128xf32>
    %26 = tpu.matmul %25, %22, %cst_20 {dimension_numbers = #tpu.dot_dimension_numbers<[1], [0], [0], [1], [0, 0, 1, 1], [], []>} : vector<8x128xbf16>, vector<128x128xbf16>, vector<8x128xf32> -> vector<8x128xf32>
    %27 = vector.broadcast %24 : vector<1x128xf32> to vector<8x128xf32>
    %28 = arith.addf %26, %27 : vector<8x128xf32>
    %cst_21 = arith.constant 0.000000e+00 : f32
    %29 = vector.broadcast %cst_21 : f32 to vector<8x128xf32>
    %30 = arith.maximumf %28, %29 : vector<8x128xf32>
    %c3 = arith.constant 3 : index
    %c0_22 = arith.constant 0 : index
    %c0_23 = arith.constant 0 : index
    %31 = vector.load %arg2[%c3, %c0_22, %c0_23] : memref<10x128x128xbf16, #tpu.memory_space<vmem>>, vector<1x128x128xbf16>
    %32 = vector.shape_cast %31 : vector<1x128x128xbf16> to vector<128x128xbf16>
    %c3_24 = arith.constant 3 : index
    %c0_25 = arith.constant 0 : index
    %c0_26 = arith.constant 0 : index
    %33 = vector.load %arg3[%c3_24, %c0_25, %c0_26] : memref<10x1x128xf32, #tpu.memory_space<vmem>>, vector<1x1x128xf32>
    %34 = vector.shape_cast %33 : vector<1x1x128xf32> to vector<1x128xf32>
    %35 = arith.truncf %30 : vector<8x128xf32> to vector<8x128xbf16>
    %cst_27 = arith.constant dense<0.000000e+00> : vector<8x128xf32>
    %36 = tpu.matmul %35, %32, %cst_27 {dimension_numbers = #tpu.dot_dimension_numbers<[1], [0], [0], [1], [0, 0, 1, 1], [], []>} : vector<8x128xbf16>, vector<128x128xbf16>, vector<8x128xf32> -> vector<8x128xf32>
    %37 = vector.broadcast %34 : vector<1x128xf32> to vector<8x128xf32>
    %38 = arith.addf %36, %37 : vector<8x128xf32>
    %cst_28 = arith.constant 0.000000e+00 : f32
    %39 = vector.broadcast %cst_28 : f32 to vector<8x128xf32>
    %40 = arith.maximumf %38, %39 : vector<8x128xf32>
    %c4 = arith.constant 4 : index
    %c0_29 = arith.constant 0 : index
    %c0_30 = arith.constant 0 : index
    %41 = vector.load %arg2[%c4, %c0_29, %c0_30] : memref<10x128x128xbf16, #tpu.memory_space<vmem>>, vector<1x128x128xbf16>
    %42 = vector.shape_cast %41 : vector<1x128x128xbf16> to vector<128x128xbf16>
    %c4_31 = arith.constant 4 : index
    %c0_32 = arith.constant 0 : index
    %c0_33 = arith.constant 0 : index
    %43 = vector.load %arg3[%c4_31, %c0_32, %c0_33] : memref<10x1x128xf32, #tpu.memory_space<vmem>>, vector<1x1x128xf32>
    %44 = vector.shape_cast %43 : vector<1x1x128xf32> to vector<1x128xf32>
    %45 = arith.truncf %40 : vector<8x128xf32> to vector<8x128xbf16>
    %cst_34 = arith.constant dense<0.000000e+00> : vector<8x128xf32>
    %46 = tpu.matmul %45, %42, %cst_34 {dimension_numbers = #tpu.dot_dimension_numbers<[1], [0], [0], [1], [0, 0, 1, 1], [], []>} : vector<8x128xbf16>, vector<128x128xbf16>, vector<8x128xf32> -> vector<8x128xf32>
    %47 = vector.broadcast %44 : vector<1x128xf32> to vector<8x128xf32>
    %48 = arith.addf %46, %47 : vector<8x128xf32>
    %cst_35 = arith.constant 0.000000e+00 : f32
    %49 = vector.broadcast %cst_35 : f32 to vector<8x128xf32>
    %50 = arith.maximumf %48, %49 : vector<8x128xf32>
    %c5 = arith.constant 5 : index
    %c0_36 = arith.constant 0 : index
    %c0_37 = arith.constant 0 : index
    %51 = vector.load %arg2[%c5, %c0_36, %c0_37] : memref<10x128x128xbf16, #tpu.memory_space<vmem>>, vector<1x128x128xbf16>
    %52 = vector.shape_cast %51 : vector<1x128x128xbf16> to vector<128x128xbf16>
    %c5_38 = arith.constant 5 : index
    %c0_39 = arith.constant 0 : index
    %c0_40 = arith.constant 0 : index
    %53 = vector.load %arg3[%c5_38, %c0_39, %c0_40] : memref<10x1x128xf32, #tpu.memory_space<vmem>>, vector<1x1x128xf32>
    %54 = vector.shape_cast %53 : vector<1x1x128xf32> to vector<1x128xf32>
    %55 = arith.truncf %50 : vector<8x128xf32> to vector<8x128xbf16>
    %cst_41 = arith.constant dense<0.000000e+00> : vector<8x128xf32>
    %56 = tpu.matmul %55, %52, %cst_41 {dimension_numbers = #tpu.dot_dimension_numbers<[1], [0], [0], [1], [0, 0, 1, 1], [], []>} : vector<8x128xbf16>, vector<128x128xbf16>, vector<8x128xf32> -> vector<8x128xf32>
    %57 = vector.broadcast %54 : vector<1x128xf32> to vector<8x128xf32>
    %58 = arith.addf %56, %57 : vector<8x128xf32>
    %cst_42 = arith.constant 0.000000e+00 : f32
    %59 = vector.broadcast %cst_42 : f32 to vector<8x128xf32>
    %60 = arith.maximumf %58, %59 : vector<8x128xf32>
    %c6 = arith.constant 6 : index
    %c0_43 = arith.constant 0 : index
    %c0_44 = arith.constant 0 : index
    %61 = vector.load %arg2[%c6, %c0_43, %c0_44] : memref<10x128x128xbf16, #tpu.memory_space<vmem>>, vector<1x128x128xbf16>
    %62 = vector.shape_cast %61 : vector<1x128x128xbf16> to vector<128x128xbf16>
    %c6_45 = arith.constant 6 : index
    %c0_46 = arith.constant 0 : index
    %c0_47 = arith.constant 0 : index
    %63 = vector.load %arg3[%c6_45, %c0_46, %c0_47] : memref<10x1x128xf32, #tpu.memory_space<vmem>>, vector<1x1x128xf32>
    %64 = vector.shape_cast %63 : vector<1x1x128xf32> to vector<1x128xf32>
    %65 = arith.truncf %60 : vector<8x128xf32> to vector<8x128xbf16>
    %cst_48 = arith.constant dense<0.000000e+00> : vector<8x128xf32>
    %66 = tpu.matmul %65, %62, %cst_48 {dimension_numbers = #tpu.dot_dimension_numbers<[1], [0], [0], [1], [0, 0, 1, 1], [], []>} : vector<8x128xbf16>, vector<128x128xbf16>, vector<8x128xf32> -> vector<8x128xf32>
    %67 = vector.broadcast %64 : vector<1x128xf32> to vector<8x128xf32>
    %68 = arith.addf %66, %67 : vector<8x128xf32>
    %cst_49 = arith.constant 0.000000e+00 : f32
    %69 = vector.broadcast %cst_49 : f32 to vector<8x128xf32>
    %70 = arith.maximumf %68, %69 : vector<8x128xf32>
    %c7 = arith.constant 7 : index
    %c0_50 = arith.constant 0 : index
    %c0_51 = arith.constant 0 : index
    %71 = vector.load %arg2[%c7, %c0_50, %c0_51] : memref<10x128x128xbf16, #tpu.memory_space<vmem>>, vector<1x128x128xbf16>
    %72 = vector.shape_cast %71 : vector<1x128x128xbf16> to vector<128x128xbf16>
    %c7_52 = arith.constant 7 : index
    %c0_53 = arith.constant 0 : index
    %c0_54 = arith.constant 0 : index
    %73 = vector.load %arg3[%c7_52, %c0_53, %c0_54] : memref<10x1x128xf32, #tpu.memory_space<vmem>>, vector<1x1x128xf32>
    %74 = vector.shape_cast %73 : vector<1x1x128xf32> to vector<1x128xf32>
    %75 = arith.truncf %70 : vector<8x128xf32> to vector<8x128xbf16>
    %cst_55 = arith.constant dense<0.000000e+00> : vector<8x128xf32>
    %76 = tpu.matmul %75, %72, %cst_55 {dimension_numbers = #tpu.dot_dimension_numbers<[1], [0], [0], [1], [0, 0, 1, 1], [], []>} : vector<8x128xbf16>, vector<128x128xbf16>, vector<8x128xf32> -> vector<8x128xf32>
    %77 = vector.broadcast %74 : vector<1x128xf32> to vector<8x128xf32>
    %78 = arith.addf %76, %77 : vector<8x128xf32>
    %cst_56 = arith.constant 0.000000e+00 : f32
    %79 = vector.broadcast %cst_56 : f32 to vector<8x128xf32>
    %80 = arith.maximumf %78, %79 : vector<8x128xf32>
    %c8 = arith.constant 8 : index
    %c0_57 = arith.constant 0 : index
    %c0_58 = arith.constant 0 : index
    %81 = vector.load %arg2[%c8, %c0_57, %c0_58] : memref<10x128x128xbf16, #tpu.memory_space<vmem>>, vector<1x128x128xbf16>
    %82 = vector.shape_cast %81 : vector<1x128x128xbf16> to vector<128x128xbf16>
    %c8_59 = arith.constant 8 : index
    %c0_60 = arith.constant 0 : index
    %c0_61 = arith.constant 0 : index
    %83 = vector.load %arg3[%c8_59, %c0_60, %c0_61] : memref<10x1x128xf32, #tpu.memory_space<vmem>>, vector<1x1x128xf32>
    %84 = vector.shape_cast %83 : vector<1x1x128xf32> to vector<1x128xf32>
    %85 = arith.truncf %80 : vector<8x128xf32> to vector<8x128xbf16>
    %cst_62 = arith.constant dense<0.000000e+00> : vector<8x128xf32>
    %86 = tpu.matmul %85, %82, %cst_62 {dimension_numbers = #tpu.dot_dimension_numbers<[1], [0], [0], [1], [0, 0, 1, 1], [], []>} : vector<8x128xbf16>, vector<128x128xbf16>, vector<8x128xf32> -> vector<8x128xf32>
    %87 = vector.broadcast %84 : vector<1x128xf32> to vector<8x128xf32>
    %88 = arith.addf %86, %87 : vector<8x128xf32>
    %cst_63 = arith.constant 0.000000e+00 : f32
    %89 = vector.broadcast %cst_63 : f32 to vector<8x128xf32>
    %90 = arith.maximumf %88, %89 : vector<8x128xf32>
    %c9 = arith.constant 9 : index
    %c0_64 = arith.constant 0 : index
    %c0_65 = arith.constant 0 : index
    %91 = vector.load %arg2[%c9, %c0_64, %c0_65] : memref<10x128x128xbf16, #tpu.memory_space<vmem>>, vector<1x128x128xbf16>
    %92 = vector.shape_cast %91 : vector<1x128x128xbf16> to vector<128x128xbf16>
    %c9_66 = arith.constant 9 : index
    %c0_67 = arith.constant 0 : index
    %c0_68 = arith.constant 0 : index
    %93 = vector.load %arg3[%c9_66, %c0_67, %c0_68] : memref<10x1x128xf32, #tpu.memory_space<vmem>>, vector<1x1x128xf32>
    %94 = vector.shape_cast %93 : vector<1x1x128xf32> to vector<1x128xf32>
    %95 = arith.truncf %90 : vector<8x128xf32> to vector<8x128xbf16>
    %cst_69 = arith.constant dense<0.000000e+00> : vector<8x128xf32>
    %96 = tpu.matmul %95, %92, %cst_69 {dimension_numbers = #tpu.dot_dimension_numbers<[1], [0], [0], [1], [0, 0, 1, 1], [], []>} : vector<8x128xbf16>, vector<128x128xbf16>, vector<8x128xf32> -> vector<8x128xf32>
    %97 = vector.broadcast %94 : vector<1x128xf32> to vector<8x128xf32>
    %98 = arith.addf %96, %97 : vector<8x128xf32>
    %c0_70 = arith.constant 0 : index
    %c0_71 = arith.constant 0 : index
    %99 = vector.load %arg4[%c0_70, %c0_71] : memref<8x128xf32, #tpu.memory_space<vmem>>, vector<8x128xf32>
    tpu.vector_store %arg4[%c0_70, %c0_71], %98 {strides = array<i32>} : memref<8x128xf32, #tpu.memory_space<vmem>>, vector<8x128xf32>,
    return
  }
  func.func @transform_0(%arg0: i32) -> (i32, i32) {
    %c0_i32 = arith.constant 0 : i32
    %c0_i32_0 = arith.constant 0 : i32
    return %arg0, %c0_i32 : i32, i32
  }
  func.func @transform_1(%arg0: i32) -> (i32, i32, i32) {
    %c0_i32 = arith.constant 0 : i32
    %c0_i32_0 = arith.constant 0 : i32
    %c0_i32_1 = arith.constant 0 : i32
    %c0_i32_2 = arith.constant 0 : i32
    return %c0_i32, %c0_i32_0, %c0_i32_1 : i32, i32, i32
  }
  func.func @transform_2(%arg0: i32) -> (i32, i32, i32) {
    %c0_i32 = arith.constant 0 : i32
    %c0_i32_0 = arith.constant 0 : i32
    %c0_i32_1 = arith.constant 0 : i32
    %c0_i32_2 = arith.constant 0 : i32
    return %c0_i32, %c0_i32_0, %c0_i32_1 : i32, i32, i32
  }
  func.func @transform_3(%arg0: i32) -> (i32, i32) {
    %c0_i32 = arith.constant 0 : i32
    %c0_i32_0 = arith.constant 0 : i32
    return %arg0, %c0_i32 : i32, i32
  }
}

</mosaic_0001>

<bundles_post_ra>
// kernel: neural_network_forward.1
= control target key start
LH: loop header
LB: loop body
LE: loop exit
PB: predicated region body
PF: predicated region fallthrough
CT: control target
= control target key end

     0   :  { %8 = vsyncpa [#allocation3], 0  ;;  %s1900_s0 = inlined_call_operand.vmem [shape: f32[8,128], index: 0, kind: input, shape index: {}]   ;;  %s1901_s1 = inlined_call_operand.hbm [shape: bf16[10,128,128], index: 1, kind: input, shape index: {}]   ;;  %s1902_s2 = inlined_call_operand.vmem [shape: f32[10,1,128], index: 2, kind: input, shape index: {}]   ;;  %s1903_s3 = inlined_call_operand.hbm [shape: f32[8,128], index: 3, kind: output, shape index: {}]  }
   0x1   :  { %9 = vsyncpa [#allocation4], 0  ;;  %s1717_s12 = smov [#allocation2]   ;;  %s1669_s16 = scalar_lea.hbm %s1901_s1, 10240 }
   0x2   :  { %s17_s13 = sshll.u32 %s1717_s12, 4  ;;  %p1670_p0 = scmp.ne.s32.totalorder %s1901_s1, %s1669_s16  ;;  %s18_s13 = int_to_ptr.vmem [resolvable:$true] %s17_s13 }
   0x3   :  { %p1673_p1 = scmp.lt.u32.totalorder %s1669_s16, %s1901_s1 }
   0x5   :  { %p1675_p2 = pnand %p1673_p1, %p1670_p0 }
   0x7   :  { %1678 = shalt.err (!%p1675_p2)
}
   0x8   :  { %s1679_s21 = scalar_lea.vmem %s18_s13, 10240  ;;  %p1684_p4 = scmp.lt.s32.totalorder %s18_s13, %s18_s13 }
   0x9   :  { %p1680_p3 = scmp.ne.s32.totalorder %s18_s13, %s1679_s21  ;;  %p1685_p5 = scmp.lt.s32.totalorder %s1679_s21, %s1679_s21 }
   0xb   :  { %p1686_p6 = por %p1685_p5, %p1684_p4 }
   0xd   :  { %p1687_p7 = pnand %p1686_p6, %p1680_p3 }
   0xf   :  { %1690 = shalt.err (!%p1687_p7)
}
  0x10   :  { %s1718_s22 = smov 64   ;;  %s1719_s23 = smov 4  }
  0x11   :  { %23 = dma.hbm_to_vmem [thread:$0]  %s1901_s1, 10240, %s18_s13, [#allocation3], %s1718_s22, %s1718_s22, %s1719_s23  }
  0x12   :  { %1713 = dma.done.wait [#allocation3], 10240  }
  0x13   :  { %1714 = vsyncadd [#allocation3], 4294957056  ;;  %v1720_v0 = vmov 0.0   ;;  %vm1721_vm0 = vmmov 0   ;;  %v1589_v1 = vld [vmem:[#allocation2] sm:$0xff]   ;;  %v1590_v2 = vld [vmem:[#allocation2 + $0x8] sm:$0xff]  }
  0x14   :  { %1383 = vmatprep.subr.bf16.mxu0 %v1720_v0  ;;  %1399 = vmatprep.mubr.msk.bf16.mxu0 %vm1721_vm0, %v1720_v0  ;;  %v1591_v3 = vld [vmem:[#allocation2 + $0x10] sm:$0xff]   ;;  %v1597_v4 = vld [vmem:[#allocation2 + $0x40] sm:$0xff]   ;;  %v1592_v5 = vld [vmem:[#allocation2 + $0x18] sm:$0xff]   ;;  %s1722_s19 = smov [#allocation5]  }
  0x15   :  { %1403 = vmatprep.subr.bf16.mxu1 %v1720_v0  ;;  %1419 = vmatprep.mubr.msk.bf16.mxu1 %vm1721_vm0, %v1720_v0  ;;  %v1598_v6 = vld [vmem:[#allocation2 + $0x48] sm:$0xff]   ;;  %v1593_v7 = vld [vmem:[#allocation2 + $0x20] sm:$0xff]   ;;  %v1599_v8 = vld [vmem:[#allocation2 + $0x50] sm:$0xff]   ;;  %s1185_s20 = sshll.u32 %s1722_s19, 4  ;;  %s1186_s20 = int_to_ptr.vmem [resolvable:$true] %s1185_s20 }
  0x16   :  { %1384 = vmatpush3.bf16.msra.mxu0 %v1589_v1  ;;  %1404 = vmatpush3.bf16.msra.mxu1 %v1597_v4  ;;  %v1594_v9 = vld [vmem:[#allocation2 + $0x28] sm:$0xff]   ;;  %v1600_v10 = vld [vmem:[#allocation2 + $0x58] sm:$0xff]   ;;  %v1595_v11 = vld [vmem:[#allocation2 + $0x30] sm:$0xff]   ;;  %s1691_s21 = scalar_lea.vmem %s1186_s20, 128  ;;  %p1696_p9 = scmp.lt.s32.totalorder %s1186_s20, %s1186_s20 }
  0x17   :  { %1385 = vmatprep.subr.bf16.mxu0 %v1720_v0  ;;  %1405 = vmatprep.subr.bf16.mxu1 %v1720_v0  ;;  %v1601_v12 = vld [vmem:[#allocation2 + $0x60] sm:$0xff]   ;;  %v1596_v13 = vld [vmem:[#allocation2 + $0x38] sm:$0xff]   ;;  %v1602_v15 = vld [vmem:[#allocation2 + $0x68] sm:$0xff]   ;;  %p1692_p8 = scmp.ne.s32.totalorder %s1186_s20, %s1691_s21  ;;  %p1697_p10 = scmp.lt.s32.totalorder %s1691_s21, %s1691_s21 }
  0x18   :  { %v30_v14 = vld [vmem:[%s1900_s0] sm:$0xff]  ;;  %v1603_v17 = vld [vmem:[#allocation2 + $0x70] sm:$0xff]   ;;  %v1604_v18 = vld [vmem:[#allocation2 + $0x78] sm:$0xff]  }
  0x19   :  { %v48_v16 = vpack.c.bf16 %v30_v14, %v30_v14  ;;  %v1605_v19 = vld [vmem:[#allocation2 + $0x80] sm:$0xff]   ;;  %v1606_v20 = vld [vmem:[#allocation2 + $0x88] sm:$0xff]   ;;  %v1607_v21 = vld [vmem:[#allocation2 + $0x90] sm:$0xff]   ;;  %p1698_p11 = por %p1697_p10, %p1696_p9 }
  0x1a   :  { %1386 = vmatpush3.bf16.msra.mxu0 %v1590_v2  ;;  %1406 = vmatpush3.bf16.msra.mxu1 %v1598_v6  ;;  %v1608_v22 = vld [vmem:[#allocation2 + $0x98] sm:$0xff]   ;;  %v1609_v23 = vld [vmem:[#allocation2 + $0xa0] sm:$0xff]   ;;  %v1610_v24 = vld [vmem:[#allocation2 + $0xa8] sm:$0xff]  }
  0x1b   :  { %1387 = vmatprep.subr.bf16.mxu0 %v1720_v0  ;;  %1407 = vmatprep.subr.bf16.mxu1 %v1720_v0  ;;  %v1194_v25 = vld [vmem:[%s1902_s2] ss:$0 sm:$0xff]  ;;  %v1611_v33 = vld [vmem:[#allocation2 + $0xb0] sm:$0xff]   ;;  %v1612_v34 = vld [vmem:[#allocation2 + $0xb8] sm:$0xff]   ;;  %p1699_p12 = pnand %p1698_p11, %p1692_p8 }
  0x1c   :  { %v1613_v35 = vld [vmem:[#allocation2 + $0xc0] sm:$0xff]   ;;  %v1614_v36 = vld [vmem:[#allocation2 + $0xc8] sm:$0xff]   ;;  %v1615_v37 = vld [vmem:[#allocation2 + $0xd0] sm:$0xff]  }
  0x1d   :  { %v1616_v38 = vld [vmem:[#allocation2 + $0xd8] sm:$0xff]   ;;  %v1617_v39 = vld [vmem:[#allocation2 + $0xe0] sm:$0xff]   ;;  %v1618_v40 = vld [vmem:[#allocation2 + $0xe8] sm:$0xff]  }
  0x1e   :  { %1388 = vmatpush3.bf16.msra.mxu0 %v1591_v3  ;;  %1408 = vmatpush3.bf16.msra.mxu1 %v1599_v8  ;;  %v1204_v41 = vld [vmem:[%s1902_s2 + $0x1] ss:$0 sm:$0xff]  ;;  %v1619_v49 = vld [vmem:[#allocation2 + $0xf0] sm:$0xff]   ;;  %v1620_v50 = vld [vmem:[#allocation2 + $0xf8] sm:$0xff]  }
  0x1f   :  { %1389 = vmatprep.subr.bf16.mxu0 %v1720_v0  ;;  %1409 = vmatprep.subr.bf16.mxu1 %v1720_v0  ;;  %v1621_v51 = vld [vmem:[#allocation2 + $0x100] sm:$0xff]   ;;  %v1622_v52 = vld [vmem:[#allocation2 + $0x108] sm:$0xff]   ;;  %v1623_v53 = vld [vmem:[#allocation2 + $0x110] sm:$0xff]  }
  0x20   :  { %v1624_v54 = vld [vmem:[#allocation2 + $0x118] sm:$0xff]   ;;  %v1625_v55 = vld [vmem:[#allocation2 + $0x120] sm:$0xff]   ;;  %v1626_v56 = vld [vmem:[#allocation2 + $0x128] sm:$0xff]  }
  0x21   :  { %v1214_v57 = vld [vmem:[%s1902_s2 + $0x2] ss:$0 sm:$0xff]  ;;  %v1627_v2 = vld [vmem:[#allocation2 + $0x130] sm:$0xff]   ;;  %v1628_v3 = vld [vmem:[#allocation2 + $0x138] sm:$0xff]  }
  0x22   :  { %1390 = vmatpush3.bf16.msra.mxu0 %v1592_v5  ;;  %1410 = vmatpush3.bf16.msra.mxu1 %v1600_v10  ;;  %v1629_v4 = vld [vmem:[#allocation2 + $0x140] sm:$0xff]   ;;  %v1630_v5 = vld [vmem:[#allocation2 + $0x148] sm:$0xff]   ;;  %v1631_v6 = vld [vmem:[#allocation2 + $0x150] sm:$0xff]  }
  0x23   :  { %1391 = vmatprep.subr.bf16.mxu0 %v1720_v0  ;;  %1411 = vmatprep.subr.bf16.mxu1 %v1720_v0  ;;  %v1633_v8 = vld [vmem:[#allocation2 + $0x160] sm:$0xff]  }
  0x24   :  { %v1224_v10 = vld [vmem:[%s1902_s2 + $0x3] ss:$0 sm:$0xff] }
  0x26   :  { %1392 = vmatpush3.bf16.msra.mxu0 %v1593_v7  ;;  %1412 = vmatpush3.bf16.msra.mxu1 %v1601_v12  ;;  %v1632_v7 = vld [vmem:[#allocation2 + $0x158] sm:$0xff]  }
  0x27   :  { %1393 = vmatprep.subr.bf16.mxu0 %v1720_v0  ;;  %1413 = vmatprep.subr.bf16.mxu1 %v1720_v0 }
  0x2a   :  { %1394 = vmatpush3.bf16.msra.mxu0 %v1594_v9  ;;  %1414 = vmatpush3.bf16.msra.mxu1 %v1602_v15  ;;  %v1634_v9 = vld [vmem:[#allocation2 + $0x168] sm:$0xff]  }
  0x2b   :  { %1395 = vmatprep.subr.bf16.mxu0 %v1720_v0  ;;  %1415 = vmatprep.subr.bf16.mxu1 %v1720_v0 }
  0x2e   :  { %1396 = vmatpush3.bf16.msra.mxu0 %v1595_v11  ;;  %1416 = vmatpush3.bf16.msra.mxu1 %v1603_v17 }
  0x2f   :  { %1397 = vmatprep.subr.bf16.mxu0 %v1720_v0  ;;  %1417 = vmatprep.subr.bf16.mxu1 %v1720_v0 }
  0x32   :  { %1398 = vmatpush3.bf16.msra.mxu0 %v1596_v13  ;;  %1418 = vmatpush3.bf16.msra.mxu1 %v1604_v18  ;;  %v1635_v18 = vld [vmem:[#allocation2 + $0x170] sm:$0xff]  }
  0x33   :  { %1423 = vmatprep.subr.bf16.mxu0 %v1720_v0  ;;  %1443 = vmatprep.subr.bf16.mxu1 %v1720_v0 }
  0x35   :  { %1400 = vmatmul.mubr.bf16.vlgmr.msra.gmra.mrb[0].mxu0 %v48_v16 }
  0x36   :  { %1439 = vmatprep.mubr.msk.bf16.mxu0 %vm1721_vm0, %v1720_v0  ;;  %1424 = vmatpush3.bf16.msra.mxu0 %v1605_v19  ;;  %v1636_v19 = vld [vmem:[#allocation2 + $0x178] sm:$0xff]  }
  0x37   :  { %1425 = vmatprep.subr.bf16.mxu0 %v1720_v0 }
  0x3a   :  { %1426 = vmatpush3.bf16.msra.mxu0 %v1606_v20  ;;  %v1637_v20 = vld [vmem:[#allocation2 + $0x180] sm:$0xff]  }
  0x3b   :  { %1427 = vmatprep.subr.bf16.mxu0 %v1720_v0 }
  0x3e   :  { %1428 = vmatpush3.bf16.msra.mxu0 %v1607_v21  ;;  %v1638_v21 = vld [vmem:[#allocation2 + $0x188] sm:$0xff]  }
  0x3f   :  { %1429 = vmatprep.subr.bf16.mxu0 %v1720_v0 }
  0x42   :  { %1430 = vmatpush3.bf16.msra.mxu0 %v1608_v22  ;;  %v1639_v22 = vld [vmem:[#allocation2 + $0x190] sm:$0xff]  }
  0x43   :  { %1431 = vmatprep.subr.bf16.mxu0 %v1720_v0 }
  0x46   :  { %1432 = vmatpush3.bf16.msra.mxu0 %v1609_v23  ;;  %v1640_v23 = vld [vmem:[#allocation2 + $0x198] sm:$0xff]  }
  0x47   :  { %1433 = vmatprep.subr.bf16.mxu0 %v1720_v0 }
  0x4a   :  { %1434 = vmatpush3.bf16.msra.mxu0 %v1610_v24  ;;  %v1641_v24 = vld [vmem:[#allocation2 + $0x1a0] sm:$0xff]  }
  0x4b   :  { %1435 = vmatprep.subr.bf16.mxu0 %v1720_v0 }
  0x4e   :  { %1436 = vmatpush3.bf16.msra.mxu0 %v1611_v33 }
  0x4f   :  { %1437 = vmatprep.subr.bf16.mxu0 %v1720_v0 }
  0x52   :  { %1438 = vmatpush3.bf16.msra.mxu0 %v1612_v34  ;;  %v1643_v34 = vld [vmem:[#allocation2 + $0x1b0] sm:$0xff]  }
  0x53   :  { %1463 = vmatprep.subr.bf16.mxu0 %v1720_v0 }
 0x108   :  { %v137_v26 = vpop.f32.mrb[0].mxu0 }
 0x109   :  { %v138_v27 = vadd.f32 %v1194_v25, %v137_v26  ;;  %v1401_v28 = vpop.f32.mrb[1].mxu0  ;;  %v1642_v25 = vld [vmem:[#allocation2 + $0x1a8] sm:$0xff]   ;;  %v1234_v26 = vld [vmem:[%s1902_s2 + $0x4] ss:$0 sm:$0xff] }
 0x10a   :  { %v140_v29 = vpop.f32.mrb[2].mxu0 }
 0x10b   :  { %v143_v30 = vmax.f32 %v138_v27, 0.0  ;;  %v1402_v31 = vpop.f32.mrb[3].mxu0 }
 0x10d   :  { %v163_v32 = vpack.c.bf16 %v143_v30, %v143_v30 }
 0x10f   :  { %1420 = vmatmul.mubr.bf16.vlgmr.msra.gmra.mrb[0].mxu1 %v163_v32 }
 0x110   :  { %1459 = vmatprep.mubr.msk.bf16.mxu1 %vm1721_vm0, %v1720_v0  ;;  %1444 = vmatpush3.bf16.msra.mxu1 %v1613_v35  ;;  %v1644_v35 = vld [vmem:[#allocation2 + $0x1b8] sm:$0xff]  }
 0x111   :  { %1445 = vmatprep.subr.bf16.mxu1 %v1720_v0 }
 0x114   :  { %1446 = vmatpush3.bf16.msra.mxu1 %v1614_v36  ;;  %v1645_v36 = vld [vmem:[#allocation2 + $0x1c0] sm:$0xff]  }
 0x115   :  { %1447 = vmatprep.subr.bf16.mxu1 %v1720_v0 }
 0x118   :  { %1448 = vmatpush3.bf16.msra.mxu1 %v1615_v37  ;;  %v1646_v37 = vld [vmem:[#allocation2 + $0x1c8] sm:$0xff]  }
 0x119   :  { %1449 = vmatprep.subr.bf16.mxu1 %v1720_v0 }
 0x11c   :  { %1450 = vmatpush3.bf16.msra.mxu1 %v1616_v38  ;;  %v1647_v38 = vld [vmem:[#allocation2 + $0x1d0] sm:$0xff]  }
 0x11d   :  { %1451 = vmatprep.subr.bf16.mxu1 %v1720_v0 }
 0x120   :  { %1452 = vmatpush3.bf16.msra.mxu1 %v1617_v39  ;;  %v1648_v39 = vld [vmem:[#allocation2 + $0x1d8] sm:$0xff]  }
 0x121   :  { %1453 = vmatprep.subr.bf16.mxu1 %v1720_v0 }
 0x124   :  { %1454 = vmatpush3.bf16.msra.mxu1 %v1618_v40  ;;  %v1649_v40 = vld [vmem:[#allocation2 + $0x1e0] sm:$0xff]  }
 0x125   :  { %1455 = vmatprep.subr.bf16.mxu1 %v1720_v0 }
 0x128   :  { %1456 = vmatpush3.bf16.msra.mxu1 %v1619_v49 }
 0x129   :  { %1457 = vmatprep.subr.bf16.mxu1 %v1720_v0 }
 0x12c   :  { %1458 = vmatpush3.bf16.msra.mxu1 %v1620_v50  ;;  %v1651_v50 = vld [vmem:[#allocation2 + $0x1f0] sm:$0xff]  }
 0x12d   :  { %1483 = vmatprep.subr.bf16.mxu1 %v1720_v0 }
 0x1e2   :  { %v252_v42 = vpop.f32.mrb[0].mxu1 }
 0x1e3   :  { %v253_v43 = vadd.f32 %v1204_v41, %v252_v42  ;;  %v1421_v44 = vpop.f32.mrb[1].mxu1  ;;  %v1650_v41 = vld [vmem:[#allocation2 + $0x1e8] sm:$0xff]   ;;  %v1244_v42 = vld [vmem:[%s1902_s2 + $0x5] ss:$0 sm:$0xff] }
 0x1e4   :  { %v255_v45 = vpop.f32.mrb[2].mxu1 }
 0x1e5   :  { %v258_v46 = vmax.f32 %v253_v43, 0.0  ;;  %v1422_v47 = vpop.f32.mrb[3].mxu1 }
 0x1e7   :  { %v278_v48 = vpack.c.bf16 %v258_v46, %v258_v46 }
 0x1e9   :  { %1440 = vmatmul.mubr.bf16.vlgmr.msra.gmra.mrb[4].mxu0 %v278_v48 }
 0x1ea   :  { %1479 = vmatprep.mubr.msk.bf16.mxu0 %vm1721_vm0, %v1720_v0  ;;  %1464 = vmatpush3.bf16.msra.mxu0 %v1621_v51  ;;  %v1652_v51 = vld [vmem:[#allocation2 + $0x1f8] sm:$0xff]  }
 0x1eb   :  { %1465 = vmatprep.subr.bf16.mxu0 %v1720_v0 }
 0x1ee   :  { %1466 = vmatpush3.bf16.msra.mxu0 %v1622_v52  ;;  %v1653_v52 = vld [vmem:[#allocation2 + $0x200] sm:$0xff]  }
 0x1ef   :  { %1467 = vmatprep.subr.bf16.mxu0 %v1720_v0 }
 0x1f2   :  { %1468 = vmatpush3.bf16.msra.mxu0 %v1623_v53  ;;  %v1654_v53 = vld [vmem:[#allocation2 + $0x208] sm:$0xff]  }
 0x1f3   :  { %1469 = vmatprep.subr.bf16.mxu0 %v1720_v0 }
 0x1f6   :  { %1470 = vmatpush3.bf16.msra.mxu0 %v1624_v54  ;;  %v1655_v54 = vld [vmem:[#allocation2 + $0x210] sm:$0xff]  }
 0x1f7   :  { %1471 = vmatprep.subr.bf16.mxu0 %v1720_v0 }
 0x1fa   :  { %1472 = vmatpush3.bf16.msra.mxu0 %v1625_v55  ;;  %v1656_v55 = vld [vmem:[#allocation2 + $0x218] sm:$0xff]  }
 0x1fb   :  { %1473 = vmatprep.subr.bf16.mxu0 %v1720_v0 }
 0x1fe   :  { %1474 = vmatpush3.bf16.msra.mxu0 %v1626_v56  ;;  %v1657_v56 = vld [vmem:[#allocation2 + $0x220] sm:$0xff]  }
 0x1ff   :  { %1475 = vmatprep.subr.bf16.mxu0 %v1720_v0 }
 0x202   :  { %1476 = vmatpush3.bf16.msra.mxu0 %v1627_v2 }
 0x203   :  { %1477 = vmatprep.subr.bf16.mxu0 %v1720_v0 }
 0x206   :  { %1478 = vmatpush3.bf16.msra.mxu0 %v1628_v3  ;;  %v1659_v3 = vld [vmem:[#allocation2 + $0x230] sm:$0xff]  }
 0x207   :  { %1503 = vmatprep.subr.bf16.mxu0 %v1720_v0 }
 0x2bc   :  { %v367_v58 = vpop.f32.mrb[4].mxu0 }
 0x2bd   :  { %v368_v59 = vadd.f32 %v1214_v57, %v367_v58  ;;  %v1441_v60 = vpop.f32.mrb[5].mxu0  ;;  %v1658_v57 = vld [vmem:[#allocation2 + $0x228] sm:$0xff]   ;;  %v1254_v58 = vld [vmem:[%s1902_s2 + $0x6] ss:$0 sm:$0xff] }
 0x2be   :  { %v370_v61 = vpop.f32.mrb[6].mxu0 }
 0x2bf   :  { %v373_v62 = vmax.f32 %v368_v59, 0.0  ;;  %v1442_v63 = vpop.f32.mrb[7].mxu0 }
 0x2c1   :  { %v393_v1 = vpack.c.bf16 %v373_v62, %v373_v62 }
 0x2c3   :  { %1460 = vmatmul.mubr.bf16.vlgmr.msra.gmra.mrb[4].mxu1 %v393_v1 }
 0x2c4   :  { %1499 = vmatprep.mubr.msk.bf16.mxu1 %vm1721_vm0, %v1720_v0  ;;  %1484 = vmatpush3.bf16.msra.mxu1 %v1629_v4  ;;  %v1660_v4 = vld [vmem:[#allocation2 + $0x238] sm:$0xff]  }
 0x2c5   :  { %1485 = vmatprep.subr.bf16.mxu1 %v1720_v0 }
 0x2c8   :  { %1486 = vmatpush3.bf16.msra.mxu1 %v1630_v5  ;;  %v1661_v5 = vld [vmem:[#allocation2 + $0x240] sm:$0xff]  }
 0x2c9   :  { %1487 = vmatprep.subr.bf16.mxu1 %v1720_v0 }
 0x2cc   :  { %1488 = vmatpush3.bf16.msra.mxu1 %v1631_v6  ;;  %v1662_v6 = vld [vmem:[#allocation2 + $0x248] sm:$0xff]  }
 0x2cd   :  { %1489 = vmatprep.subr.bf16.mxu1 %v1720_v0 }
 0x2d0   :  { %1490 = vmatpush3.bf16.msra.mxu1 %v1632_v7  ;;  %v1663_v7 = vld [vmem:[#allocation2 + $0x250] sm:$0xff]  }
 0x2d1   :  { %1491 = vmatprep.subr.bf16.mxu1 %v1720_v0 }
 0x2d4   :  { %1492 = vmatpush3.bf16.msra.mxu1 %v1633_v8  ;;  %v1664_v8 = vld [vmem:[#allocation2 + $0x258] sm:$0xff]  }
 0x2d5   :  { %1493 = vmatprep.subr.bf16.mxu1 %v1720_v0 }
 0x2d8   :  { %1494 = vmatpush3.bf16.msra.mxu1 %v1634_v9  ;;  %v1665_v9 = vld [vmem:[#allocation2 + $0x260] sm:$0xff]  }
 0x2d9   :  { %1495 = vmatprep.subr.bf16.mxu1 %v1720_v0 }
 0x2dc   :  { %1496 = vmatpush3.bf16.msra.mxu1 %v1635_v18 }
 0x2dd   :  { %1497 = vmatprep.subr.bf16.mxu1 %v1720_v0 }
 0x2e0   :  { %1498 = vmatpush3.bf16.msra.mxu1 %v1636_v19  ;;  %v1667_v19 = vld [vmem:[#allocation2 + $0x270] sm:$0xff]  }
 0x2e1   :  { %1523 = vmatprep.subr.bf16.mxu1 %v1720_v0 }
 0x396   :  { %v482_v11 = vpop.f32.mrb[4].mxu1 }
 0x397   :  { %v483_v12 = vadd.f32 %v1224_v10, %v482_v11  ;;  %v1461_v13 = vpop.f32.mrb[5].mxu1  ;;  %v1666_v10 = vld [vmem:[#allocation2 + $0x268] sm:$0xff]   ;;  %v1264_v11 = vld [vmem:[%s1902_s2 + $0x7] ss:$0 sm:$0xff] }
 0x398   :  { %v485_v14 = vpop.f32.mrb[6].mxu1 }
 0x399   :  { %v488_v15 = vmax.f32 %v483_v12, 0.0  ;;  %v1462_v16 = vpop.f32.mrb[7].mxu1 }
 0x39b   :  { %v508_v17 = vpack.c.bf16 %v488_v15, %v488_v15 }
 0x39d   :  { %1480 = vmatmul.mubr.bf16.vlgmr.msra.gmra.mrb[8].mxu0 %v508_v17 }
 0x39e   :  { %1519 = vmatprep.mubr.msk.bf16.mxu0 %vm1721_vm0, %v1720_v0  ;;  %1504 = vmatpush3.bf16.msra.mxu0 %v1637_v20  ;;  %v1668_v20 = vld [vmem:[#allocation2 + $0x278] sm:$0xff]  }
 0x39f   :  { %1505 = vmatprep.subr.bf16.mxu0 %v1720_v0 }
 0x3a2   :  { %1506 = vmatpush3.bf16.msra.mxu0 %v1638_v21  ;;  %v1274_v21 = vld [vmem:[%s1902_s2 + $0x8] ss:$0 sm:$0xff] }
 0x3a3   :  { %1507 = vmatprep.subr.bf16.mxu0 %v1720_v0 }
 0x3a6   :  { %1508 = vmatpush3.bf16.msra.mxu0 %v1639_v22 }
 0x3a7   :  { %1509 = vmatprep.subr.bf16.mxu0 %v1720_v0 }
 0x3aa   :  { %1510 = vmatpush3.bf16.msra.mxu0 %v1640_v23 }
 0x3ab   :  { %1511 = vmatprep.subr.bf16.mxu0 %v1720_v0 }
 0x3ae   :  { %1512 = vmatpush3.bf16.msra.mxu0 %v1641_v24 }
 0x3af   :  { %1513 = vmatprep.subr.bf16.mxu0 %v1720_v0 }
 0x3b2   :  { %1514 = vmatpush3.bf16.msra.mxu0 %v1642_v25 }
 0x3b3   :  { %1515 = vmatprep.subr.bf16.mxu0 %v1720_v0 }
 0x3b6   :  { %1516 = vmatpush3.bf16.msra.mxu0 %v1643_v34 }
 0x3b7   :  { %1517 = vmatprep.subr.bf16.mxu0 %v1720_v0 }
 0x3ba   :  { %1518 = vmatpush3.bf16.msra.mxu0 %v1644_v35 }
 0x3bb   :  { %1543 = vmatprep.subr.bf16.mxu0 %v1720_v0 }
 0x470   :  { %v597_v27 = vpop.f32.mrb[8].mxu0 }
 0x471   :  { %v598_v28 = vadd.f32 %v1234_v26, %v597_v27  ;;  %v1481_v29 = vpop.f32.mrb[9].mxu0 }
 0x472   :  { %v600_v30 = vpop.f32.mrb[10].mxu0  ;;  %v1284_v29 = vld [vmem:[%s1902_s2 + $0x9] ss:$0 sm:$0xff] }
 0x473   :  { %v603_v31 = vmax.f32 %v598_v28, 0.0  ;;  %v1482_v32 = vpop.f32.mrb[11].mxu0 }
 0x475   :  { %v623_v33 = vpack.c.bf16 %v603_v31, %v603_v31 }
 0x477   :  { %1500 = vmatmul.mubr.bf16.vlgmr.msra.gmra.mrb[8].mxu1 %v623_v33 }
 0x478   :  { %1539 = vmatprep.mubr.msk.bf16.mxu1 %vm1721_vm0, %v1720_v0  ;;  %1524 = vmatpush3.bf16.msra.mxu1 %v1645_v36 }
 0x479   :  { %1525 = vmatprep.subr.bf16.mxu1 %v1720_v0 }
 0x47c   :  { %1526 = vmatpush3.bf16.msra.mxu1 %v1646_v37 }
 0x47d   :  { %1527 = vmatprep.subr.bf16.mxu1 %v1720_v0 }
 0x480   :  { %1528 = vmatpush3.bf16.msra.mxu1 %v1647_v38 }
 0x481   :  { %1529 = vmatprep.subr.bf16.mxu1 %v1720_v0 }
 0x484   :  { %1530 = vmatpush3.bf16.msra.mxu1 %v1648_v39 }
 0x485   :  { %1531 = vmatprep.subr.bf16.mxu1 %v1720_v0 }
 0x488   :  { %1532 = vmatpush3.bf16.msra.mxu1 %v1649_v40 }
 0x489   :  { %1533 = vmatprep.subr.bf16.mxu1 %v1720_v0 }
 0x48c   :  { %1534 = vmatpush3.bf16.msra.mxu1 %v1650_v41 }
 0x48d   :  { %1535 = vmatprep.subr.bf16.mxu1 %v1720_v0 }
 0x490   :  { %1536 = vmatpush3.bf16.msra.mxu1 %v1651_v50 }
 0x491   :  { %1537 = vmatprep.subr.bf16.mxu1 %v1720_v0 }
 0x494   :  { %1538 = vmatpush3.bf16.msra.mxu1 %v1652_v51 }
 0x495   :  { %1563 = vmatprep.subr.bf16.mxu1 %v1720_v0 }
 0x54a   :  { %v712_v43 = vpop.f32.mrb[8].mxu1 }
 0x54b   :  { %v713_v44 = vadd.f32 %v1244_v42, %v712_v43  ;;  %v1501_v45 = vpop.f32.mrb[9].mxu1 }
 0x54c   :  { %v715_v46 = vpop.f32.mrb[10].mxu1 }
 0x54d   :  { %v718_v47 = vmax.f32 %v713_v44, 0.0  ;;  %v1502_v48 = vpop.f32.mrb[11].mxu1 }
 0x54f   :  { %v738_v49 = vpack.c.bf16 %v718_v47, %v718_v47 }
 0x551   :  { %1520 = vmatmul.mubr.bf16.vlgmr.msra.gmra.mrb[12].mxu0 %v738_v49 }
 0x552   :  { %1559 = vmatprep.mubr.msk.bf16.mxu0 %vm1721_vm0, %v1720_v0  ;;  %1544 = vmatpush3.bf16.msra.mxu0 %v1653_v52 }
 0x553   :  { %1545 = vmatprep.subr.bf16.mxu0 %v1720_v0 }
 0x556   :  { %1546 = vmatpush3.bf16.msra.mxu0 %v1654_v53 }
 0x557   :  { %1547 = vmatprep.subr.bf16.mxu0 %v1720_v0 }
 0x55a   :  { %1548 = vmatpush3.bf16.msra.mxu0 %v1655_v54 }
 0x55b   :  { %1549 = vmatprep.subr.bf16.mxu0 %v1720_v0 }
 0x55e   :  { %1550 = vmatpush3.bf16.msra.mxu0 %v1656_v55 }
 0x55f   :  { %1551 = vmatprep.subr.bf16.mxu0 %v1720_v0 }
 0x562   :  { %1552 = vmatpush3.bf16.msra.mxu0 %v1657_v56 }
 0x563   :  { %1553 = vmatprep.subr.bf16.mxu0 %v1720_v0 }
 0x566   :  { %1554 = vmatpush3.bf16.msra.mxu0 %v1658_v57 }
 0x567   :  { %1555 = vmatprep.subr.bf16.mxu0 %v1720_v0 }
 0x56a   :  { %1556 = vmatpush3.bf16.msra.mxu0 %v1659_v3 }
 0x56b   :  { %1557 = vmatprep.subr.bf16.mxu0 %v1720_v0 }
 0x56e   :  { %1558 = vmatpush3.bf16.msra.mxu0 %v1660_v4 }
 0x624   :  { %v827_v59 = vpop.f32.mrb[12].mxu0 }
 0x625   :  { %v828_v60 = vadd.f32 %v1254_v58, %v827_v59  ;;  %v1521_v61 = vpop.f32.mrb[13].mxu0 }
 0x626   :  { %v830_v62 = vpop.f32.mrb[14].mxu0 }
 0x627   :  { %v833_v63 = vmax.f32 %v828_v60, 0.0  ;;  %v1522_v1 = vpop.f32.mrb[15].mxu0 }
 0x629   :  { %v853_v2 = vpack.c.bf16 %v833_v63, %v833_v63 }
 0x62b   :  { %1540 = vmatmul.mubr.bf16.vlgmr.msra.gmra.mrb[12].mxu1 %v853_v2 }
 0x62c   :  { %1579 = vmatprep.mubr.msk.bf16.mxu1 %vm1721_vm0, %v1720_v0  ;;  %1564 = vmatpush3.bf16.msra.mxu1 %v1661_v5 }
 0x62d   :  { %1565 = vmatprep.subr.bf16.mxu1 %v1720_v0 }
 0x630   :  { %1566 = vmatpush3.bf16.msra.mxu1 %v1662_v6 }
 0x631   :  { %1567 = vmatprep.subr.bf16.mxu1 %v1720_v0 }
 0x634   :  { %1568 = vmatpush3.bf16.msra.mxu1 %v1663_v7 }
 0x635   :  { %1569 = vmatprep.subr.bf16.mxu1 %v1720_v0 }
 0x638   :  { %1570 = vmatpush3.bf16.msra.mxu1 %v1664_v8 }
 0x639   :  { %1571 = vmatprep.subr.bf16.mxu1 %v1720_v0 }
 0x63c   :  { %1572 = vmatpush3.bf16.msra.mxu1 %v1665_v9 }
 0x63d   :  { %1573 = vmatprep.subr.bf16.mxu1 %v1720_v0 }
 0x640   :  { %1574 = vmatpush3.bf16.msra.mxu1 %v1666_v10 }
 0x641   :  { %1575 = vmatprep.subr.bf16.mxu1 %v1720_v0 }
 0x644   :  { %1576 = vmatpush3.bf16.msra.mxu1 %v1667_v19 }
 0x645   :  { %1577 = vmatprep.subr.bf16.mxu1 %v1720_v0 }
 0x648   :  { %1578 = vmatpush3.bf16.msra.mxu1 %v1668_v20 }
 0x6fe   :  { %v942_v12 = vpop.f32.mrb[12].mxu1 }
 0x6ff   :  { %v943_v13 = vadd.f32 %v1264_v11, %v942_v12  ;;  %v1541_v14 = vpop.f32.mrb[13].mxu1 }
 0x700   :  { %v945_v15 = vpop.f32.mrb[14].mxu1 }
 0x701   :  { %v948_v16 = vmax.f32 %v943_v13, 0.0  ;;  %v1542_v17 = vpop.f32.mrb[15].mxu1 }
 0x703   :  { %v968_v18 = vpack.c.bf16 %v948_v16, %v948_v16 }
 0x705   :  { %1560 = vmatmul.mubr.bf16.vlgmr.msra.gmra.mrb[16].mxu0 %v968_v18 }
 0x7d8   :  { %v1057_v22 = vpop.f32.mrb[16].mxu0 }
 0x7d9   :  { %v1058_v23 = vadd.f32 %v1274_v21, %v1057_v22  ;;  %v1561_v24 = vpop.f32.mrb[17].mxu0 }
 0x7da   :  { %v1060_v25 = vpop.f32.mrb[18].mxu0 }
 0x7db   :  { %v1063_v26 = vmax.f32 %v1058_v23, 0.0  ;;  %v1562_v27 = vpop.f32.mrb[19].mxu0 }
 0x7dd   :  { %v1083_v28 = vpack.c.bf16 %v1063_v26, %v1063_v26 }
 0x7df   :  { %1580 = vmatmul.mubr.bf16.vlgmr.msra.gmra.mrb[16].mxu1 %v1083_v28 }
 0x8b2   :  { %v1172_v0 = vpop.f32.mrb[16].mxu1 }
 0x8b3   :  { %v1173_v30 = vadd.f32 %v1284_v29, %v1172_v0  ;;  %v1581_v31 = vpop.f32.mrb[17].mxu1 }
 0x8b4   :  { %v1175_v32 = vpop.f32.mrb[18].mxu1 }
 0x8b5   :  { %1178 = vst [vmem:[#allocation5] sm:$0xff] %v1173_v30  ;;  %v1582_v33 = vpop.f32.mrb[19].mxu1 }
 0x8b6   :  { %1702 = shalt.err (!%p1699_p12)
}
 0x8b7   :  { %s1703_s2 = scalar_lea.hbm %s1903_s3, 128 }
 0x8b8   :  { %p1704_p13 = scmp.ne.s32.totalorder %s1903_s3, %s1703_s2  ;;  %p1707_p0 = scmp.lt.u32.totalorder %s1703_s2, %s1903_s3 }
 0x8ba   :  { %p1709_p1 = pnand %p1707_p0, %p1704_p13 }
 0x8bc   :  { %1712 = shalt.err (!%p1709_p1)
}
 0x8bd   :  { %1188 = dma.vmem_to_hbm [thread:$0]  %s1186_s20, 128, %s1903_s3, [#allocation4]  }
 0x8be   :  { %1715 = dma.done.wait [#allocation4], 128  }
 0x8bf   :  { %1716 = vsyncadd [#allocation4], 4294967168 }
 0x8c0   :  { %1192 = vsyncpa [#allocation3], 1 }
 0x8c1   :  { %1193 = vsyncpa [#allocation4], 1 }

</bundles_post_ra>
